<compile_context>
chip_gen: v7x
topology: tpu7x:2x2x1
jax: 0.10.0
libtpu: 0.0.40
codegen_flags: <defaults>
</compile_context>

<pallas_src>
import jax
import jax.numpy as jnp
from jax.experimental import pallas as pl
from jax.experimental.pallas import tpu as pltpu

_LANES = 128  # vreg lane width; output last dim kept lane-dense.


def nonlinear_forward(x, w, W, b, *, tile_rows=2048):
    """Pallas equivalent of NonlinearModel.forward.

    x: any-shape float array.
    w, W, b: the module's scalar nn.Parameters, baked in as compile-time
             constants (Python floats / 0-d arrays).
    tile_rows: rows of 128 lanes per grid block (512-2048 is the sweet spot;
               2048 -> 1 MiB f32 per tile buffer).
    """
    w = float(w)
    W = float(W)
    b = float(b)

    orig_shape = x.shape
    dtype = x.dtype
    n = x.size
    if n == 0:
        return x

    # ---- lane-dense repacking: (...,) -> (rows, 128), padded only if needed.
    rows_needed = pl.cdiv(n, _LANES)
    if rows_needed <= tile_rows:
        # Block == full array: always a legal block shape, single grid step.
        block_rows = rows_needed
    else:
        # tile_rows is a multiple of 8 -> satisfies the (8, 128) constraint.
        block_rows = tile_rows
    rows = pl.cdiv(rows_needed, block_rows) * block_rows
    n_pad = rows * _LANES

    flat = jnp.ravel(x)
    if n_pad != n:
        flat = jnp.pad(flat, (0, n_pad - n))  # only copy when actually needed
    x2 = flat.reshape(rows, _LANES)

    grid = (rows // block_rows,)

    # Params closed over as Python floats -> immediates in the kernel body.
    def _kernel(x_ref, o_ref):
        # tanh -> EUP slot; scalar mul/add -> VPU; kernel is HBM-bound once
        # lane-dense + tiled, so compute hides under the DMA pipeline.
        o_ref[...] = W * jnp.tanh(w * x_ref[...]) + b

    out2 = pl.pallas_call(
        _kernel,
        out_shape=jax.ShapeDtypeStruct((rows, _LANES), dtype),
        grid=grid,
        in_specs=[pl.BlockSpec((block_rows, _LANES), lambda i: (i, 0))],
        out_specs=pl.BlockSpec((block_rows, _LANES), lambda i: (i, 0)),
        compiler_params=pltpu.CompilerParams(
            dimension_semantics=("parallel",),
        ),
    )(x2)

    return out2.reshape(-1)[:n].reshape(orig_shape)


def _reference(x, w, W, b):
    return W * jnp.tanh(w * x) + b


if __name__ == "__main__":
    # Deterministic parameter init mirroring __init__(m, b):
    #   w = m / 10 with m = 2.0  ->  w = 0.2 ;  W = 10.0 ;  b = 0.5
    m_init = 2.0
    b_init = 0.5
    w_val = m_init / 10.0
    W_val = 10.0
    b_val = b_init

    # --- Test 1: the module's literal input: linspace(-1, 1, 100).unsqueeze(1)
    N = 100
    x1 = jnp.linspace(-1.0, 1.0, N, dtype=jnp.float32).reshape(N, 1)
    out1 = jax.block_until_ready(nonlinear_forward(x1, w_val, W_val, b_val))
    ref1 = _reference(x1, w_val, W_val, b_val)
    assert out1.shape == (N, 1)
    assert jnp.allclose(out1, ref1, atol=1e-5, rtol=1e-5)

    # --- Test 2: random odd-shaped input (PRNGKey(0)) with a tiny tile_rows to
    # exercise the padded, multi-block, lane-dense grid path at small size.
    key = jax.random.PRNGKey(0)
    x2 = jax.random.normal(key, (257, 33), dtype=jnp.float32)
    out2 = jax.block_until_ready(
        nonlinear_forward(x2, w_val, W_val, b_val, tile_rows=8)
    )
    ref2 = _reference(x2, w_val, W_val, b_val)
    assert out2.shape == x2.shape
    assert jnp.allclose(out2, ref2, atol=1e-5, rtol=1e-5)

    # --- Test 3: exactly-aligned size (no host-side pad copy path).
    x3 = jax.random.normal(jax.random.PRNGKey(0), (16, 128), dtype=jnp.float32)
    out3 = jax.block_until_ready(nonlinear_forward(x3, w_val, W_val, b_val))
    ref3 = _reference(x3, w_val, W_val, b_val)
    assert out3.shape == x3.shape
    assert jnp.allclose(out3, ref3, atol=1e-5, rtol=1e-5)

    print("KERNEL_OK")
</pallas_src>

<mosaic_0001>
module attributes {stable_mosaic.version = 11 : i64} {
  func.func @_kernel(%arg0: i32, %arg1: memref<1x128xf32, #tpu.memory_space<vmem>>, %arg2: memref<1x128xf32, #tpu.memory_space<vmem>>) attributes {dimension_semantics = [#tpu.dimension_semantics<parallel>], iteration_bounds = array<i64: 1>, scalar_prefetch = 0 : i64, scratch_operands = 0 : i64, tpu.core_type = #tpu.core_type<tc>, window_params = [{transform_indices = @transform_0, window_bounds = array<i64: 1, 128>}, {transform_indices = @transform_1, window_bounds = array<i64: 1, 128>}]} {
    %c0 = arith.constant 0 : index
    %c0_0 = arith.constant 0 : index
    %0 = vector.load %arg1[%c0, %c0_0] : memref<1x128xf32, #tpu.memory_space<vmem>>, vector<1x128xf32>
    %cst = arith.constant 2.000000e-01 : f32
    %1 = vector.broadcast %cst : f32 to vector<1x128xf32>
    %2 = arith.mulf %1, %0 : vector<1x128xf32>
    %3 = math.tanh %2 : vector<1x128xf32>
    %cst_1 = arith.constant 1.000000e+01 : f32
    %4 = vector.broadcast %cst_1 : f32 to vector<1x128xf32>
    %5 = arith.mulf %4, %3 : vector<1x128xf32>
    %cst_2 = arith.constant 5.000000e-01 : f32
    %6 = vector.broadcast %cst_2 : f32 to vector<1x128xf32>
    %7 = arith.addf %5, %6 : vector<1x128xf32>
    %c0_3 = arith.constant 0 : index
    %c0_4 = arith.constant 0 : index
    %8 = vector.load %arg2[%c0_3, %c0_4] : memref<1x128xf32, #tpu.memory_space<vmem>>, vector<1x128xf32>
    tpu.vector_store %arg2[%c0_3, %c0_4], %7 {strides = array<i32>} : memref<1x128xf32, #tpu.memory_space<vmem>>, vector<1x128xf32>,
    return
  }
  func.func @transform_0(%arg0: i32) -> (i32, i32) {
    %c0_i32 = arith.constant 0 : i32
    %c0_i32_0 = arith.constant 0 : i32
    return %arg0, %c0_i32 : i32, i32
  }
  func.func @transform_1(%arg0: i32) -> (i32, i32) {
    %c0_i32 = arith.constant 0 : i32
    %c0_i32_0 = arith.constant 0 : i32
    return %arg0, %c0_i32 : i32, i32
  }
}

</mosaic_0001>

<bundles_post_ra>
// kernel: tpu_custom_call.1
= control target key start
LH: loop header
LB: loop body
LE: loop exit
PB: predicated region body
PF: predicated region fallthrough
CT: control target
= control target key end

     0   :  { %6 = vsyncpa [#allocation3], 0  ;;  %s130_s0 = inlined_call_operand.hbm [shape: f32[1,128], index: 0, kind: input, shape index: {}]   ;;  %s131_s1 = inlined_call_operand.hbm [shape: f32[1,128], index: 1, kind: output, shape index: {}]  }
   0x1   :  { %7 = vsyncpa [#allocation4], 0  ;;  %s94_s6 = smov [#allocation2]   ;;  %s46_s10 = scalar_lea.hbm %s130_s0, 16 }
   0x2   :  { %s14_s7 = sshll.u32 %s94_s6, 4  ;;  %p47_p0 = scmp.ne.s32.totalorder %s130_s0, %s46_s10  ;;  %s15_s7 = int_to_ptr.vmem [resolvable:$true] %s14_s7 }
   0x3   :  { %p50_p1 = scmp.lt.u32.totalorder %s46_s10, %s130_s0 }
   0x5   :  { %p52_p2 = pnand %p50_p1, %p47_p0 }
   0x7   :  { %55 = shalt.err (!%p52_p2)
}
   0x8   :  { %s56_s15 = scalar_lea.vmem %s15_s7, 16  ;;  %s60_s16 = scalar_lea.vmem %s15_s7, 32 }
   0x9   :  { %p57_p3 = scmp.ne.s32.totalorder %s15_s7, %s56_s15  ;;  %p61_p4 = scmp.lt.s32.totalorder %s15_s7, %s15_s7 }
   0xa   :  { %p62_p5 = scmp.lt.s32.totalorder %s60_s16, %s56_s15 }
   0xc   :  { %p63_p6 = por %p62_p5, %p61_p4 }
   0xe   :  { %p64_p7 = pnand %p63_p6, %p57_p3 }
  0x10   :  { %67 = shalt.err (!%p64_p7)
}
  0x11   :  { %17 = dma.hbm_to_vmem [thread:$0]  %s130_s0, 16, %s15_s7, [#allocation3]  }
  0x12   :  { %90 = dma.done.wait [#allocation3], 16  }
  0x13   :  { %91 = vsyncadd [#allocation3], 4294967280  ;;  %v21_v0 = vld [vmem:[#allocation2] sm:$0x1]  ;;  %s95_s19 = smov [#allocation5]  }
  0x14   :  { %v22_v1 = vmul.f32 0.2, %v21_v0  ;;  %s33_s20 = sshll.u32 %s95_s19, 4  ;;  %s34_s20 = int_to_ptr.vmem [resolvable:$true] %s33_s20 }
  0x15   :  { %s68_s21 = scalar_lea.vmem %s34_s20, 16  ;;  %s72_s22 = scalar_lea.vmem %s34_s20, 32 }
  0x16   :  { %44 = vtanh.f32 %v22_v1  ;;  %p69_p8 = scmp.ne.s32.totalorder %s34_s20, %s68_s21  ;;  %p73_p9 = scmp.lt.s32.totalorder %s34_s20, %s34_s20 }
  0x17   :  { %p74_p10 = scmp.lt.s32.totalorder %s72_s22, %s68_s21 }
  0x19   :  { %p75_p11 = por %p74_p10, %p73_p9 }
  0x1b   :  { %p76_p12 = pnand %p75_p11, %p69_p8 }
  0x20   :  { %v45_v2 = vpop.eup %44 }
  0x21   :  { %v24_v3 = vmul.f32 10.0, %v45_v2 }
  0x23   :  { %v25_v4 = vadd.f32 0.5, %v24_v3 }
  0x25   :  { %26 = vst [vmem:[#allocation5] sm:$0x1] %v25_v4 }
  0x26   :  { %79 = shalt.err (!%p76_p12)
}
  0x27   :  { %s80_s24 = scalar_lea.hbm %s131_s1, 16 }
  0x28   :  { %p81_p13 = scmp.ne.s32.totalorder %s131_s1, %s80_s24  ;;  %p84_p0 = scmp.lt.u32.totalorder %s80_s24, %s131_s1 }
  0x2a   :  { %p86_p1 = pnand %p84_p0, %p81_p13 }
  0x2c   :  { %89 = shalt.err (!%p86_p1)
}
  0x2d   :  { %36 = dma.vmem_to_hbm [thread:$0]  %s34_s20, 16, %s131_s1, [#allocation4]  }
  0x2e   :  { %92 = dma.done.wait [#allocation4], 16  }
  0x2f   :  { %93 = vsyncadd [#allocation4], 4294967280 }
  0x30   :  { %40 = vsyncpa [#allocation3], 1 }
  0x31   :  { %41 = vsyncpa [#allocation4], 1 }

</bundles_post_ra>
